<compile_context>
chip_gen: v5e
topology: v5e:2x2
jax: 0.10.0
libtpu: 0.0.40
codegen_flags: <defaults>
</compile_context>

<pallas_src>
import functools

import jax
import jax.numpy as jnp
from jax.experimental import pallas as pl
from jax.experimental.pallas import tpu as pltpu


def _round_up(x, m):
    return (x + m - 1) // m * m


def _attention_pooling_kernel(x_ref, bias_ref, w1_ref, b1_ref, w2_ref, out_ref):
    # x_ref:    (Bb, T, D)    tokens for Bb batch elements
    # bias_ref: (Bb, T)       additive mask bias (0 = keep, -1e30 = masked)
    # w1_ref:   (D, U)        linear1 weight (transposed for x @ W)
    # b1_ref:   (1, U)        linear1 bias
    # w2_ref:   (U, Kp)       linear2 weight (transposed, zero-padded to Kp)
    # out_ref:  (Bb, Kp*D)    lane-dense pooled output
    Bb, T, D = x_ref.shape
    Kp = w2_ref.shape[1]

    x = x_ref[...]                                          # (Bb, T, D)
    xf = x.reshape(Bb * T, D)                               # merge rows for MXU

    # linear1 + tanh (single big matmul, f32 accumulate)
    a = jnp.tanh(
        jnp.dot(xf, w1_ref[...], preferred_element_type=jnp.float32)
        + b1_ref[...]
    )                                                       # (Bb*T, U)

    # linear2 -> attention logits for all (batch, token) rows at once
    scores = jnp.dot(a, w2_ref[...], preferred_element_type=jnp.float32)  # (Bb*T, Kp)
    scores = scores.reshape(Bb, T, Kp)
    scores = jnp.transpose(scores, (0, 2, 1))               # (Bb, Kp, T): T on lanes

    # masked softmax over the token axis (cross-lane reduce)
    scores = scores + bias_ref[...][:, None, :]             # broadcast (Bb, 1, T)
    m = jnp.max(scores, axis=-1, keepdims=True)             # (Bb, Kp, 1)
    p = jnp.exp(scores - m)                                 # (Bb, Kp, T)
    denom = jnp.sum(p, axis=-1, keepdims=True) + 1e-13
    attn = p * pl.reciprocal(denom, approx=False)           # (Bb, Kp, T)

    # s = attn @ tokens per batch element: (Bb, Kp, D) batched MXU matmul
    s = jnp.einsum("bkt,btd->bkd", attn, x,
                   preferred_element_type=jnp.float32)

    # lane-dense store
    out_ref[...] = s.reshape(Bb, Kp * D).astype(out_ref.dtype)


@functools.partial(jax.jit, static_argnames=("block_b",))
def attention_pooling(tokens, mask, w1, b1, w2, *, block_b=32):
    """tokens: [B, T, D] f32, mask: [B, T], w1: [U, D], b1: [U], w2: [K, U]."""
    B, T, D = tokens.shape
    U = w1.shape[0]
    K = w2.shape[0]
    Kp = _round_up(K, 8)                         # sublane-align context vectors

    # Pick a batch block: multiple of 8, <= padded batch.
    Bb = _round_up(min(block_b, _round_up(B, 8)), 8)
    B_pad = _round_up(B, Bb)

    tokens_p = tokens
    mask_p = mask
    if B_pad != B:
        tokens_p = jnp.pad(tokens, ((0, B_pad - B), (0, 0), (0, 0)))
        mask_p = jnp.pad(mask, ((0, B_pad - B), (0, 0)))

    # Fold the mask into a lane-dense additive bias [B_pad, T].
    bias = jnp.where(mask_p > 0, 0.0, -1e30).astype(jnp.float32)

    # Orient / pad parameters for in-kernel "x @ W".
    w1_t = jnp.transpose(w1)                     # (D, U)
    b1_r = b1.reshape(1, U)                      # (1, U)
    w2_pad = jnp.zeros((Kp, U), dtype=w2.dtype).at[:K].set(w2)
    w2_t = jnp.transpose(w2_pad)                 # (U, Kp)

    out = pl.pallas_call(
        _attention_pooling_kernel,
        out_shape=jax.ShapeDtypeStruct((B_pad, Kp * D), tokens.dtype),
        grid_spec=pltpu.PrefetchScalarGridSpec(
            num_scalar_prefetch=0,
            grid=(B_pad // Bb,),
            in_specs=[
                pl.BlockSpec((Bb, T, D), lambda b: (b, 0, 0)),   # tokens
                pl.BlockSpec((Bb, T), lambda b: (b, 0)),         # mask bias
                pl.BlockSpec((D, U), lambda b: (0, 0)),          # W1^T (resident)
                pl.BlockSpec((1, U), lambda b: (0, 0)),          # b1
                pl.BlockSpec((U, Kp), lambda b: (0, 0)),         # W2^T padded
            ],
            out_specs=pl.BlockSpec((Bb, Kp * D), lambda b: (b, 0)),
        ),
        compiler_params=pltpu.CompilerParams(
            dimension_semantics=("parallel",),   # megacore split on v7x
        ),
    )(tokens_p, bias, w1_t, b1_r, w2_t)

    # Drop batch padding and the padded context vectors, then flatten like
    # s.view(B, -1) in the PyTorch module.
    out = out[:B].reshape(B, Kp, D)[:, :K, :].reshape(B, K * D)
    return out
    # TODO(synk): for very large T, add an "arbitrary" grid axis over T with an
    # online-softmax accumulator (pl.when init/finalize) to bound VMEM on v7x.


def _reference(tokens, mask, w1, b1, w2):
    a = jnp.tanh(jnp.einsum("btd,ud->btu", tokens, w1) + b1)     # linear1 + tanh
    a = jnp.einsum("btu,ku->btk", a, w2)                          # linear2
    a = jnp.transpose(a, (0, 2, 1))                               # [B, K, T]
    a = a + jnp.where(mask[:, None, :] > 0, 0.0, -1e30)
    a = jax.nn.softmax(a, axis=-1)
    s = jnp.einsum("bkt,btd->bkd", a, tokens)
    return s.reshape(tokens.shape[0], -1)


if __name__ == "__main__":
    # Small shapes consistent with the module's forward.
    B, T, D = 16, 8, 32                    # batch, seq, in_features
    U, K = 32, 5                           # dimension_context_vector_u, number_context_vectors

    key = jax.random.PRNGKey(0)
    k_tok, k_w1, k_b1, k_w2 = jax.random.split(key, 4)

    tokens = jax.random.normal(k_tok, (B, T, D), dtype=jnp.float32)
    # mask: most rows fully valid, a couple of rows with trailing tokens masked.
    mask = jnp.ones((B, T), dtype=jnp.float32)
    mask = mask.at[1, T - 3:].set(0.0)
    mask = mask.at[7, T - 5:].set(0.0)

    # Deterministic parameter init (synthetic, not a checkpoint load).
    w1 = jax.random.normal(k_w1, (U, D), dtype=jnp.float32) * 0.1   # linear1.weight
    b1 = jax.random.normal(k_b1, (U,), dtype=jnp.float32) * 0.1     # linear1.bias
    w2 = jax.random.normal(k_w2, (K, U), dtype=jnp.float32) * 0.1   # linear2.weight (no bias)

    # block_b=8 -> grid of 2 batch blocks (exercises the pipeline / megacore path).
    out = attention_pooling(tokens, mask, w1, b1, w2, block_b=8)
    out = jax.block_until_ready(out)

    ref = _reference(tokens, mask, w1, b1, w2)
    assert out.shape == (B, K * D)
    assert jnp.allclose(out, ref, atol=1e-4, rtol=1e-4)

    print("KERNEL_OK")
</pallas_src>

<mosaic_0001>
module attributes {stable_mosaic.version = 11 : i64} {
  func.func @_attention_pooling_kernel(%arg0: i32, %arg1: memref<8x8x32xf32, #tpu.memory_space<vmem>>, %arg2: memref<8x8xf32, #tpu.memory_space<vmem>>, %arg3: memref<32x32xf32, #tpu.memory_space<vmem>>, %arg4: memref<1x32xf32, #tpu.memory_space<vmem>>, %arg5: memref<32x8xf32, #tpu.memory_space<vmem>>, %arg6: memref<8x256xf32, #tpu.memory_space<vmem>>) attributes {dimension_semantics = [#tpu.dimension_semantics<parallel>], iteration_bounds = array<i64: 2>, scalar_prefetch = 0 : i64, scratch_operands = 0 : i64, tpu.core_type = #tpu.core_type<tc>, window_params = [{transform_indices = @transform_0, window_bounds = array<i64: 8, 8, 32>}, {transform_indices = @transform_1, window_bounds = array<i64: 8, 8>}, {pipeline_mode = #tpu.pipeline_mode<synchronous>, transform_indices = @transform_2, window_bounds = array<i64: 32, 32>}, {pipeline_mode = #tpu.pipeline_mode<synchronous>, transform_indices = @transform_3, window_bounds = array<i64: 1, 32>}, {pipeline_mode = #tpu.pipeline_mode<synchronous>, transform_indices = @transform_4, window_bounds = array<i64: 32, 8>}, {transform_indices = @transform_5, window_bounds = array<i64: 8, 256>}]} {
    %c0 = arith.constant 0 : index
    %c0_0 = arith.constant 0 : index
    %c0_1 = arith.constant 0 : index
    %0 = vector.load %arg1[%c0, %c0_0, %c0_1] : memref<8x8x32xf32, #tpu.memory_space<vmem>>, vector<8x8x32xf32>
    %1 = vector.shape_cast %0 : vector<8x8x32xf32> to vector<64x32xf32>
    %c0_2 = arith.constant 0 : index
    %c0_3 = arith.constant 0 : index
    %2 = vector.load %arg3[%c0_2, %c0_3] : memref<32x32xf32, #tpu.memory_space<vmem>>, vector<32x32xf32>
    %cst = arith.constant dense<0.000000e+00> : vector<64x32xf32>
    %3 = tpu.matmul %1, %2, %cst {dimension_numbers = #tpu.dot_dimension_numbers<[1], [0], [0], [1], [0, 0, 1, 1], [], []>} : vector<64x32xf32>, vector<32x32xf32>, vector<64x32xf32> -> vector<64x32xf32>
    %c0_4 = arith.constant 0 : index
    %c0_5 = arith.constant 0 : index
    %4 = vector.load %arg4[%c0_4, %c0_5] : memref<1x32xf32, #tpu.memory_space<vmem>>, vector<1x32xf32>
    %5 = vector.broadcast %4 : vector<1x32xf32> to vector<64x32xf32>
    %6 = arith.addf %3, %5 : vector<64x32xf32>
    %7 = math.tanh %6 : vector<64x32xf32>
    %c0_6 = arith.constant 0 : index
    %c0_7 = arith.constant 0 : index
    %8 = vector.load %arg5[%c0_6, %c0_7] : memref<32x8xf32, #tpu.memory_space<vmem>>, vector<32x8xf32>
    %cst_8 = arith.constant dense<0.000000e+00> : vector<64x8xf32>
    %9 = tpu.matmul %7, %8, %cst_8 {dimension_numbers = #tpu.dot_dimension_numbers<[1], [0], [0], [1], [0, 0, 1, 1], [], []>} : vector<64x32xf32>, vector<32x8xf32>, vector<64x8xf32> -> vector<64x8xf32>
    %10 = vector.shape_cast %9 : vector<64x8xf32> to vector<8x8x8xf32>
    %11 = tpu.transpose %10, [0, 2, 1] : vector<8x8x8xf32> -> vector<8x8x8xf32>
    %c0_9 = arith.constant 0 : index
    %c0_10 = arith.constant 0 : index
    %12 = vector.load %arg2[%c0_9, %c0_10] : memref<8x8xf32, #tpu.memory_space<vmem>>, vector<8x8xf32>
    %13 = vector.shape_cast %12 : vector<8x8xf32> to vector<8x1x8xf32>
    %14 = vector.broadcast %13 : vector<8x1x8xf32> to vector<8x8x8xf32>
    %15 = arith.addf %11, %14 : vector<8x8x8xf32>
    %cst_11 = arith.constant dense<0xFF800000> : vector<8x8xf32>
    %16 = vector.multi_reduction <maximumf>, %15, %cst_11 [2] : vector<8x8x8xf32> to vector<8x8xf32>
    %17 = vector.shape_cast %16 : vector<8x8xf32> to vector<8x8x1xf32>
    %18 = vector.broadcast %17 : vector<8x8x1xf32> to vector<8x8x8xf32>
    %19 = arith.subf %15, %18 : vector<8x8x8xf32>
    %20 = math.exp %19 : vector<8x8x8xf32>
    %cst_12 = arith.constant dense<0.000000e+00> : vector<8x8xf32>
    %21 = vector.multi_reduction <add>, %20, %cst_12 [2] : vector<8x8x8xf32> to vector<8x8xf32>
    %22 = vector.shape_cast %21 : vector<8x8xf32> to vector<8x8x1xf32>
    %cst_13 = arith.constant 9.99999982E-14 : f32
    %23 = vector.broadcast %cst_13 : f32 to vector<8x8x1xf32>
    %24 = arith.addf %22, %23 : vector<8x8x1xf32>
    %25 = tpu.reciprocal %24 : vector<8x8x1xf32> -> vector<8x8x1xf32>
    %26 = vector.broadcast %25 : vector<8x8x1xf32> to vector<8x8x8xf32>
    %27 = arith.mulf %20, %26 : vector<8x8x8xf32>
    "tpu.trace_start"() <{level = 10 : i32, message = "bkt,btd->bkd"}> : () -> ()
    %cst_14 = arith.constant dense<0.000000e+00> : vector<8x8x32xf32>
    %28 = tpu.matmul %27, %0, %cst_14 {dimension_numbers = #tpu.dot_dimension_numbers<[2], [1], [1], [2], [0, 0, 0, 1, 1, 2], [0], [0]>} : vector<8x8x8xf32>, vector<8x8x32xf32>, vector<8x8x32xf32> -> vector<8x8x32xf32>
    "tpu.trace_stop"() : () -> ()
    %29 = vector.shape_cast %28 : vector<8x8x32xf32> to vector<8x256xf32>
    %c0_15 = arith.constant 0 : index
    %c0_16 = arith.constant 0 : index
    %30 = vector.load %arg6[%c0_15, %c0_16] : memref<8x256xf32, #tpu.memory_space<vmem>>, vector<8x256xf32>
    tpu.vector_store %arg6[%c0_15, %c0_16], %29 {strides = array<i32>} : memref<8x256xf32, #tpu.memory_space<vmem>>, vector<8x256xf32>,
    return
  }
  func.func @transform_0(%arg0: i32) -> (i32, i32, i32) {
    %c0_i32 = arith.constant 0 : i32
    %c0_i32_0 = arith.constant 0 : i32
    %c0_i32_1 = arith.constant 0 : i32
    return %arg0, %c0_i32, %c0_i32_0 : i32, i32, i32
  }
  func.func @transform_1(%arg0: i32) -> (i32, i32) {
    %c0_i32 = arith.constant 0 : i32
    %c0_i32_0 = arith.constant 0 : i32
    return %arg0, %c0_i32 : i32, i32
  }
  func.func @transform_2(%arg0: i32) -> (i32, i32) {
    %c0_i32 = arith.constant 0 : i32
    %c0_i32_0 = arith.constant 0 : i32
    %c0_i32_1 = arith.constant 0 : i32
    return %c0_i32, %c0_i32_0 : i32, i32
  }
  func.func @transform_3(%arg0: i32) -> (i32, i32) {
    %c0_i32 = arith.constant 0 : i32
    %c0_i32_0 = arith.constant 0 : i32
    %c0_i32_1 = arith.constant 0 : i32
    return %c0_i32, %c0_i32_0 : i32, i32
  }
  func.func @transform_4(%arg0: i32) -> (i32, i32) {
    %c0_i32 = arith.constant 0 : i32
    %c0_i32_0 = arith.constant 0 : i32
    %c0_i32_1 = arith.constant 0 : i32
    return %c0_i32, %c0_i32_0 : i32, i32
  }
  func.func @transform_5(%arg0: i32) -> (i32, i32) {
    %c0_i32 = arith.constant 0 : i32
    %c0_i32_0 = arith.constant 0 : i32
    return %arg0, %c0_i32 : i32, i32
  }
}

</mosaic_0001>

<bundles_post_ra>
// kernel: attention_pooling.1
= control target key start
LH: loop header
LB: loop body
LE: loop exit
PB: predicated region body
PF: predicated region fallthrough
CT: control target
= control target key end

     0   :  { %s1442_s18 = smov 0   ;;  %s1622_s0 = inlined_call_operand.vmem [shape: f32[16,8,32], index: 0, kind: input, shape index: {}]   ;;  %s1623_s1 = inlined_call_operand.vmem [shape: f32[16,8], index: 1, kind: input, shape index: {}]   ;;  %s1624_s2 = inlined_call_operand.vmem [shape: f32[32,32], index: 2, kind: input, shape index: {}]   ;;  %s1625_s3 = inlined_call_operand.vmem [shape: f32[1,32], index: 3, kind: input, shape index: {}]   ;;  %s1626_s4 = inlined_call_operand.vmem [shape: f32[32,8], index: 4, kind: input, shape index: {}]   ;;  %s1627_s5 = inlined_call_operand.vmem [shape: f32[16,256], index: 5, kind: output, shape index: {}]  }
   0x1 LB: > { %s1448_s19 = sadd.s32 4294967295, %s1405_s18   ;;  %p1295_p0 = scmp.ge.s32.totalorder %s1405_s18, 1  ;;  %s1405_s18 = sphi %s1442_s18, %s15_s18  }
   0x2   : > { %p197_p1 = scmp.lt.s32.totalorder %s1405_s18, 3 }
   0x4   : > { %p198_p2 = pnand %p1295_p0, %p197_p1 }
   0x5   : > { %s1296_s24 = sshll.u32 (!%p198_p2), %s1448_s19, 3  ;;  %p235_p4 = scmp.lt.s32.totalorder (!%p198_p2), %s1448_s19, 1 }
   0x6   : > { %201 = sbr.rel (%p198_p2) target bundleno = 1037 (0x40d), region = 40  ;;  %p230_p3 = scmp.lt.s32.totalorder (!%p198_p2), %s1296_s24, 15 }
   0x7   : > { %s1410_s25 = smov (!%p198_p2), 64   ;;  %s1411_s26 = smov (!%p198_p2), 96  }
   0xb   : > { %v255_v0 = vld [vmem:[%s1624_s2 + $0x18] sm:$0xff]  ;;  %v254_v1 = vld [vmem:[%s1624_s2 + $0x10] sm:$0xff]  ;;  %v253_v2 = vld [vmem:[%s1624_s2 + $0x8] sm:$0xff]  ;;  %s1631_s24 = smov (!%p230_p3, %s1296_s24), 15  ;;  %vm260_vm0 = vcmask 261120   ;;  %s1633_s19 = smov (!%p235_p4, %s1448_s19), 1 }
   0xc   : > { %297 = vmatpush.msra.mxu0 %v255_v0  ;;  %1328 = vmatpush.msra.mxu2 %v255_v0  ;;  %v252_v3 = vld [vmem:[%s1624_s2] sm:$0xff]  ;;  %s1297_s29 = sshll.u32 %s1631_s24, 3  ;;  %v337_v12 = vld [vmem:[%s1626_s4 + $0x18] sm:$0xff]  ;;  %v336_v13 = vld [vmem:[%s1626_s4 + $0x10] sm:$0xff]  ;;  %s1298_s20 = sshll.u32 %s1633_s19, 3  ;;  %vm692_vm1 = vcmask 64512  }
   0xd   : > { %s233_s7 = scalar_lea.vmem %s1622_s0, %s1297_s29  ;;  %374 = vmatpush.msra.mxu1 %v337_v12  ;;  %1332 = vmatpush.msra.mxu3 %v337_v12  ;;  %v335_v14 = vld [vmem:[%s1626_s4 + $0x8] sm:$0xff]  ;;  %v334_v15 = vld [vmem:[%s1626_s4] sm:$0xff]  ;;  %s238_s23 = scalar_lea.vmem %s1623_s1, %s1298_s20 }
   0xe   : > { %298 = vmatpush.msra.mxu0 %v254_v1  ;;  %1329 = vmatpush.msra.mxu2 %v254_v1  ;;  %v244_v4 = vld [vmem:[%s233_s7] sm:$0xff]  ;;  %v1469_v5 = vld [vmem:[%s233_s7 + $0x30] sm:$0xff]  ;;  %v245_v7 = vld [vmem:[%s233_s7 + $0x8] sm:$0xff]  ;;  %s1409_s24 = smov 32   ;;  %s1327_s27 = sshll.u32 %s1633_s19, 4 }
   0xf   : > { %v246_v6 = vld [vmem:[%s233_s7 + $0x10] sm:$0xff]  ;;  %v1474_v8 = vld [vmem:[%s233_s7 + $0x38] sm:$0xff]  ;;  %v1480_v10 = vld [vmem:[%s233_s7 + $0x20] sm:$0xff]  ;;  %375 = vmatpush.msra.mxu1 %v336_v13  ;;  %1333 = vmatpush.msra.mxu3 %v336_v13  ;;  %s243_s30 = scalar_lea.vmem %s1627_s5, %s1327_s27 }
  0x10   : > { %299 = vmatpush.msra.mxu0 %v253_v2  ;;  %1330 = vmatpush.msra.mxu2 %v253_v2  ;;  %v247_v9 = vld [vmem:[%s233_s7 + $0x18] sm:$0xff]  ;;  %v1484_v11 = vld [vmem:[%s233_s7 + $0x28] sm:$0xff]  ;;  %v1350_v16 = vld [vmem:[%s1625_s3] ss:$0 sm:$0xff] }
  0x11   : > { %376 = vmatpush.msra.mxu1 %v335_v14  ;;  %1334 = vmatpush.msra.mxu3 %v335_v14  ;;  %v659_v49 = vld [vmem:[%s238_s23] sm:$0xff] }
  0x12   : > { %300 = vmatpush.msra.mxu0 %v252_v3  ;;  %1331 = vmatpush.msra.mxu2 %v252_v3  ;;  %v668_v50 = vperm.slane %v659_v49, 0  ;;  %v661_v53 = vrot.slane %v659_v49, 1  ;;  %v662_v58 = vrot.slane %v659_v49, 2  ;;  %v663_v63 = vrot.slane %v659_v49, 3 }
  0x13   : > { %1301 = vmatmul.msk.f32.vlgmr.msra.gmra.mxu0 %vm260_vm0, %v244_v4  ;;  %1307 = vmatmul.msk.f32.vlgmr.msra.gmra.mxu2 %vm260_vm0, %v1469_v5  ;;  %v664_v3 = vrot.slane %v659_v49, 4  ;;  %v666_v13 = vrot.slane %v659_v49, 6 }
  0x14   : > { %911 = vmatpush.msrb.mxu2 %v244_v4  ;;  %377 = vmatpush.msra.mxu1 %v334_v15  ;;  %v669_v55 = vperm.slane %v661_v53, 0  ;;  %v670_v60 = vperm.slane %v662_v58, 0  ;;  %v671_v2 = vperm.slane %v663_v63, 0 }
  0x15   : > { %1335 = vmatpush.msra.mxu3 %v334_v15  ;;  %v665_v15 = vrot.slane %v659_v49, 5 }
  0x16   : > { %957 = vmatpush.msra.mxu2 %v246_v6 }
  0x17   : > { %934 = vmatpush.msrb.mxu3 %v245_v7 }
  0x1b   : > { %1302 = vmatmul.msk.f32.gmra.mxu0 %vm260_vm0, %v245_v7  ;;  %1308 = vmatmul.msk.f32.gmra.mxu2 %vm260_vm0, %v1474_v8  ;;  %v672_v7 = vperm.slane %v664_v3, 0 }
  0x23   : > { %1303 = vmatmul.msk.f32.gmra.mxu0 %vm260_vm0, %v246_v6 }
  0x2b   : > { %1304 = vmatmul.msk.f32.gmra.mxu0 %vm260_vm0, %v247_v9 }
  0x33   : > { %1305 = vmatmul.msk.f32.gmra.mxu0 %vm260_vm0, %v1480_v10 }
  0x3b   : > { %1306 = vmatmul.msk.f32.gmra.mxu0 %vm260_vm0, %v1484_v11 }
  0x90   : > { %v302_v17 = vpop.f32.mrf.mxu0 }
  0x91   : > { %v303_v18 = vadd.f32 %v1350_v16, %v302_v17  ;;  %v673_v17 = vperm.slane %v665_v15, 0 }
  0x93   : > { %1351 = vtanh.f32 %v303_v18 }
  0x96   : > { %v320_v22 = vpop.f32.mrf.mxu2 }
  0x97   : > { %v321_v23 = vadd.f32 %v1350_v16, %v320_v22 }
  0x98   : > { %v305_v19 = vpop.f32.mrf.mxu0 }
  0x99   : > { %v1352_v20 = vpop.eup %1351  ;;  %v306_v21 = vadd.f32 %v1350_v16, %v305_v19 }
  0x9a   : > { %1309 = vmatmul.msk.f32.vlgmr.msra.gmra.mxu1 %vm260_vm0, %v1352_v20 }
  0x9b   : > { %1353 = vtanh.f32 %v306_v21  ;;  %v667_v21 = vrot.slane %v659_v49, 7 }
  0x9c   : > { %1355 = vtanh.f32 %v321_v23 }
  0x9e   : > { %v323_v27 = vpop.f32.mrf.mxu2 }
  0x9f   : > { %v324_v29 = vadd.f32 %v1350_v16, %v323_v27 }
  0xa0   : > { %v308_v24 = vpop.f32.mrf.mxu0 }
  0xa1   : > { %v1354_v25 = vpop.eup %1353  ;;  %v309_v26 = vadd.f32 %v1350_v16, %v308_v24  ;;  %v675_v24 = vperm.slane %v667_v21, 0 }
  0xa2   : > { %1310 = vmatmul.msk.f32.gmra.mxu1 %vm260_vm0, %v1354_v25  ;;  %v1356_v28 = vpop.eup %1355 }
  0xa3   : > { %1357 = vtanh.f32 %v309_v26  ;;  %1315 = vmatmul.msk.f32.vlgmr.msra.gmra.mxu3 %vm260_vm0, %v1356_v28 }
  0xa4   : > { %1359 = vtanh.f32 %v324_v29  ;;  %980 = vmatpush.msra.mxu3 %v247_v9 }
  0xa8   : > { %v311_v30 = vpop.f32.mrf.mxu0 }
  0xa9   : > { %v1358_v31 = vpop.eup %1357  ;;  %v312_v32 = vadd.f32 %v1350_v16, %v311_v30 }
  0xaa   : > { %1311 = vmatmul.msk.f32.gmra.mxu1 %vm260_vm0, %v1358_v31  ;;  %v1360_v33 = vpop.eup %1359 }
  0xab   : > { %1361 = vtanh.f32 %v312_v32  ;;  %1316 = vmatmul.msk.f32.gmra.mxu3 %vm260_vm0, %v1360_v33 }
  0xb0   : > { %v314_v34 = vpop.f32.mrf.mxu0 }
  0xb1   : > { %v1362_v35 = vpop.eup %1361  ;;  %v315_v36 = vadd.f32 %v1350_v16, %v314_v34 }
  0xb2   : > { %1312 = vmatmul.msk.f32.gmra.mxu1 %vm260_vm0, %v1362_v35 }
  0xb3   : > { %1363 = vtanh.f32 %v315_v36 }
  0xb8   : > { %v317_v37 = vpop.f32.mrf.mxu0 }
  0xb9   : > { %v1364_v38 = vpop.eup %1363  ;;  %v318_v39 = vadd.f32 %v1350_v16, %v317_v37  ;;  %v674_v16 = vperm.slane %v666_v13, 0 }
  0xba   : > { %1313 = vmatmul.msk.f32.gmra.mxu1 %vm260_vm0, %v1364_v38 }
  0xbb   : > { %1365 = vtanh.f32 %v318_v39 }
  0xc1   : > { %v1366_v40 = vpop.eup %1365 }
  0xc2   : > { %1314 = vmatmul.msk.f32.gmra.mxu1 %vm260_vm0, %v1366_v40 }
 0x117   : > { %v379_v41 = vpop.f32.mrf.mxu1 }
 0x118   : > { %403 = vxpose.xlu0.b32.start.end [1/1] (short) (narrow) %v379_v41, 8 }
 0x11f   : > { %v382_v42 = vpop.f32.mrf.mxu1 }
 0x120   : > { %435 = vxpose.xlu0.b32.start.end [1/1] (short) (narrow) %v382_v42, 8 }
 0x126   : > { %v397_v47 = vpop.f32.mrf.mxu3 }
 0x127   : > { %v385_v43 = vpop.f32.mrf.mxu1 }
 0x128   : > { %467 = vxpose.xlu1.b32.start.end [1/1] (short) (narrow) %v385_v43, 8 }
 0x12e   : > { %v400_v48 = vpop.f32.mrf.mxu3 }
 0x12f   : > { %v388_v44 = vpop.f32.mrf.mxu1 }
 0x130   : > { %499 = vxpose.xlu1.b32.start.end [1/1] (short) (narrow) %v388_v44, 8 }
 0x137   : > { %v391_v45 = vpop.f32.mrf.mxu1 }
 0x138   : > { %531 = vxpose.xlu2.b32.start.end [1/1] (short) (narrow) %v391_v45, 8 }
 0x13f   : > { %v394_v46 = vpop.f32.mrf.mxu1 }
 0x140   : > { %563 = vxpose.xlu2.b32.start.end [1/1] (short) (narrow) %v394_v46, 8 }
 0x148   : > { %595 = vxpose.xlu2.b32.start.end [1/1] (short) (narrow) %v397_v47, 8 }
 0x150   : > { %627 = vxpose.xlu2.b32.start.end [1/1] (short) (narrow) %v400_v48, 8 }
 0x1bc   : > { %v419_v51 = vpop.trf.xlu0 }
 0x1bd   : > { %v684_v52 = vadd.f32 %v668_v50, %v419_v51 }
 0x1bf   : > { %v693_v54 = vsel %vm692_vm1, %v684_v52, -inf }
 0x1c0   : > { %694 = vmax.xlane.f32.xlu0 %v693_v54 }
 0x1c4   : > { %v451_v56 = vpop.trf.xlu0 }
 0x1c5   : > { %v685_v57 = vadd.f32 %v669_v55, %v451_v56 }
 0x1c7   : > { %v696_v59 = vsel %vm692_vm1, %v685_v57, -inf }
 0x1c8   : > { %697 = vmax.xlane.f32.xlu1 %v696_v59 }
 0x1cc   : > { %v483_v61 = vpop.trf.xlu1 }
 0x1cd   : > { %v686_v62 = vadd.f32 %v670_v60, %v483_v61 }
 0x1cf   : > { %v699_v0 = vsel %vm692_vm1, %v686_v62, -inf }
 0x1d0   : > { %700 = vmax.xlane.f32.xlu2 %v699_v0 }
 0x1d1   : > { %v547_v1 = vpop.trf.xlu2 }
 0x1d2   : > { %v688_v14 = vadd.f32 %v672_v7, %v547_v1 }
 0x1d4   : > { %v515_v4 = vpop.trf.xlu1  ;;  %v705_v18 = vsel %vm692_vm1, %v688_v14, -inf }
 0x1d5   : > { %v687_v6 = vadd.f32 %v671_v2, %v515_v4 }
 0x1d7   : > { %v702_v9 = vsel %vm692_vm1, %v687_v6, -inf }
 0x1d8   : > { %703 = vmax.xlane.f32.xlu1 %v702_v9 }
 0x1d9   : > { %v579_v12 = vpop.trf.xlu2 }
 0x1da   : > { %v689_v22 = vadd.f32 %v673_v17, %v579_v12 }
 0x1dc   : > { %v708_v25 = vsel %vm692_vm1, %v689_v22, -inf }
 0x1e0   : > { %706 = vmax.xlane.f32.xlu1 %v705_v18 }
 0x1e1   : > { %v611_v19 = vpop.trf.xlu2 }
 0x1e2   : > { %v690_v20 = vadd.f32 %v674_v16, %v611_v19 }
 0x1e4   : > { %v711_v23 = vsel %vm692_vm1, %v690_v20, -inf }
 0x1e5   : > { %712 = vmax.xlane.f32.xlu0 %v711_v23 }
 0x1e8   : > { %709 = vmax.xlane.f32.xlu1 %v708_v25 }
 0x1e9   : > { %v643_v26 = vpop.trf.xlu2 }
 0x1ea   : > { %v691_v27 = vadd.f32 %v675_v24, %v643_v26 }
 0x1ec   : > { %v714_v28 = vsel %vm692_vm1, %v691_v27, -inf }
 0x1f0   : > { %715 = vmax.xlane.f32.xlu1 %v714_v28 }
 0x233   : > { %v695_v29 = vpop.xlane.xlu0 %694 }
 0x234   : > { %v717_v30 = vsub.f32 %v684_v52, %v695_v29 }
 0x236   : > { %v725_v31 = vmul.f32 1.442695, %v717_v30 }
 0x238   : > { %1367 = vpow2.f32 %v725_v31 }
 0x23b   : > { %v698_v32 = vpop.xlane.xlu1 %697 }
 0x23c   : > { %v718_v33 = vsub.f32 %v685_v57, %v698_v32 }
 0x23e   : > { %v1527_v34 = vpop.eup %1367  ;;  %v727_v35 = vmul.f32 1.442695, %v718_v33 }
 0x23f   : > { %v741_v36 = vsel %vm692_vm1, %v1527_v34, 0.0 }
 0x240   : > { %1369 = vpow2.f32 %v727_v35  ;;  %742 = vadd.xlane.f32.xlu0 %v741_v36 }
 0x243   : > { %v701_v37 = vpop.xlane.xlu2 %700 }
 0x244   : > { %v719_v38 = vsub.f32 %v686_v62, %v701_v37 }
 0x246   : > { %v1531_v39 = vpop.eup %1369  ;;  %v729_v40 = vmul.f32 1.442695, %v719_v38 }
 0x247   : > { %v744_v41 = vsel %vm692_vm1, %v1531_v39, 0.0 }
 0x248   : > { %1371 = vpow2.f32 %v729_v40  ;;  %745 = vadd.xlane.f32.xlu1 %v744_v41 }
 0x24b   : > { %v704_v42 = vpop.xlane.xlu1 %703 }
 0x24c   : > { %v720_v43 = vsub.f32 %v687_v6, %v704_v42 }
 0x24e   : > { %v1535_v44 = vpop.eup %1371  ;;  %v731_v45 = vmul.f32 1.442695, %v720_v43 }
 0x24f   : > { %v747_v46 = vsel %vm692_vm1, %v1535_v44, 0.0 }
 0x250   : > { %1373 = vpow2.f32 %v731_v45  ;;  %748 = vadd.xlane.f32.xlu0 %v747_v46 }
 0x253   : > { %v707_v47 = vpop.xlane.xlu1 %706 }
 0x254   : > { %v721_v48 = vsub.f32 %v688_v14, %v707_v47 }
 0x256   : > { %v1539_v49 = vpop.eup %1373  ;;  %v733_v50 = vmul.f32 1.442695, %v721_v48 }
 0x257   : > { %v750_v51 = vsel %vm692_vm1, %v1539_v49, 0.0 }
 0x258   : > { %1375 = vpow2.f32 %v733_v50  ;;  %751 = vadd.xlane.f32.xlu2 %v750_v51  ;;  %v713_v52 = vpop.xlane.xlu0 %712 }
 0x259   : > { %v723_v53 = vsub.f32 %v690_v20, %v713_v52 }
 0x25b   : > { %v737_v54 = vmul.f32 1.442695, %v723_v53  ;;  %v710_v55 = vpop.xlane.xlu1 %709 }
 0x25c   : > { %v722_v56 = vsub.f32 %v689_v22, %v710_v55 }
 0x25d   : > { %1377 = vpow2.f32 %v737_v54 }
 0x25e   : > { %v1543_v57 = vpop.eup %1375  ;;  %v735_v58 = vmul.f32 1.442695, %v722_v56 }
 0x25f   : > { %v753_v59 = vsel %vm692_vm1, %v1543_v57, 0.0 }
 0x260   : > { %1379 = vpow2.f32 %v735_v58  ;;  %754 = vadd.xlane.f32.xlu1 %v753_v59 }
 0x263   : > { %v1547_v60 = vpop.eup %1377  ;;  %v716_v61 = vpop.xlane.xlu1 %715 }
 0x264   : > { %v724_v62 = vsub.f32 %v691_v27, %v716_v61  ;;  %v759_v63 = vsel %vm692_vm1, %v1547_v60, 0.0 }
 0x265   : > { %760 = vadd.xlane.f32.xlu2 %v759_v63 }
 0x266   : > { %v1551_v0 = vpop.eup %1379  ;;  %v739_v1 = vmul.f32 1.442695, %v724_v62 }
 0x267   : > { %v756_v2 = vsel %vm692_vm1, %v1551_v0, 0.0 }
 0x268   : > { %1381 = vpow2.f32 %v739_v1  ;;  %757 = vadd.xlane.f32.xlu0 %v756_v2 }
 0x26e   : > { %v1555_v3 = vpop.eup %1381 }
 0x26f   : > { %v762_v4 = vsel %vm692_vm1, %v1555_v3, 0.0 }
 0x270   : > { %763 = vadd.xlane.f32.xlu1 %v762_v4 }
 0x2b3   : > { %v743_v6 = vpop.xlane.xlu0 %742 }
 0x2b4   : > { %v765_v7 = vadd.f32 1e-13, %v743_v6 }
 0x2b6   : > { %1383 = vrcp.f32 %v765_v7  ;;  %v784_v17 = vand.u32 2147483648, %v765_v7  ;;  %v782_v18 = vand.u32 2147483647, %v765_v7  ;;  %vm778_vm3 = vweird.f32 %v765_v7 }
 0x2b8   : > { %v785_v25 = vor.u32 1.1754944e-38, %v784_v17  ;;  %vm783_vm5 = vcmp.eq.f32.partialorder %v782_v18, 8.507059e+37 }
 0x2bb   : > { %v746_v9 = vpop.xlane.xlu1 %745 }
 0x2bc   : > { %v1384_v12 = vpop.eup %1383  ;;  %v766_v13 = vadd.f32 1e-13, %v746_v9 }
 0x2bd   : > { %v774_v14 = vmul.f32 %v1384_v12, %v765_v7  ;;  %vm779_vm2 = vweird.f32 %v1384_v12 }
 0x2be   : > { %1385 = vrcp.f32 %v766_v13  ;;  %vm780_vm4 = vmor %vm778_vm3, %vm779_vm2  ;;  %v798_v30 = vand.u32 2147483648, %v766_v13  ;;  %v796_v31 = vand.u32 2147483647, %v766_v13  ;;  %vm792_vm7 = vweird.f32 %v766_v13 }
 0x2bf   : > { %v775_v15 = vsub.f32 1.0, %v774_v14 }
 0x2c0   : > { %v799_v40 = vor.u32 1.1754944e-38, %v798_v30  ;;  %vm797_vm9 = vcmp.eq.f32.partialorder %v796_v31, 8.507059e+37 }
 0x2c1   : > { %v776_v16 = vmul.f32 %v1384_v12, %v775_v15 }
 0x2c3   : > { %v749_v19 = vpop.xlane.xlu0 %748  ;;  %v777_v20 = vadd.f32 %v1384_v12, %v776_v16 }
 0x2c4   : > { %v1386_v21 = vpop.eup %1385  ;;  %v767_v22 = vadd.f32 1e-13, %v749_v19 }
 0x2c5   : > { %v788_v23 = vmul.f32 %v1386_v21, %v766_v13  ;;  %v781_v24 = vsel %vm780_vm4, %v1384_v12, %v777_v20  ;;  %vm793_vm6 = vweird.f32 %v1386_v21 }
 0x2c6   : > { %1387 = vrcp.f32 %v767_v22  ;;  %v786_v27 = vsel %vm783_vm5, %v785_v25, %v781_v24  ;;  %vm794_vm8 = vmor %vm792_vm7, %vm793_vm6  ;;  %v812_v45 = vand.u32 2147483648, %v767_v22  ;;  %v810_v46 = vand.u32 2147483647, %v767_v22 }
 0x2c7   : > { %v789_v26 = vsub.f32 1.0, %v788_v23  ;;  %v885_v28 = vmul.f32 %v1527_v34, %v786_v27  ;;  %vm806_vm11 = vweird.f32 %v767_v22 }
 0x2c8   : > { %v813_v51 = vor.u32 1.1754944e-38, %v812_v45  ;;  %vm811_vm13 = vcmp.eq.f32.partialorder %v810_v46, 8.507059e+37 }
 0x2c9   : > { %v790_v29 = vmul.f32 %v1386_v21, %v789_v26  ;;  %1317 = vmatmul.msk.f32.vlgmr.msrb.gmra.mxu2 %vm692_vm1, %v885_v28 }
 0x2ca   : > { %1003 = vmatpush.msrb.mxu2 %v1480_v10 }
 0x2cb   : > { %v752_v32 = vpop.xlane.xlu2 %751  ;;  %v791_v33 = vadd.f32 %v1386_v21, %v790_v29 }
 0x2cc   : > { %v1388_v35 = vpop.eup %1387  ;;  %v768_v36 = vadd.f32 1e-13, %v752_v32 }
 0x2cd   : > { %v802_v37 = vmul.f32 %v1388_v35, %v767_v22  ;;  %v795_v38 = vsel %vm794_vm8, %v1386_v21, %v791_v33  ;;  %vm807_vm10 = vweird.f32 %v1388_v35 }
 0x2ce   : > { %1389 = vrcp.f32 %v768_v36  ;;  %v800_v41 = vsel %vm797_vm9, %v799_v40, %v795_v38  ;;  %vm808_vm12 = vmor %vm806_vm11, %vm807_vm10  ;;  %v826_v59 = vand.u32 2147483648, %v768_v36  ;;  %v824_v62 = vand.u32 2147483647, %v768_v36 }
 0x2cf   : > { %v803_v34 = vsub.f32 1.0, %v802_v37  ;;  %v886_v42 = vmul.f32 %v1531_v39, %v800_v41  ;;  %vm820_vm15 = vweird.f32 %v768_v36 }
 0x2d0   : > { %v827_v4 = vor.u32 1.1754944e-38, %v826_v59  ;;  %vm825_vm3 = vcmp.eq.f32.partialorder %v824_v62, 8.507059e+37 }
 0x2d1   : > { %v804_v43 = vmul.f32 %v1388_v35, %v803_v34  ;;  %1318 = vmatmul.msk.f32.vlgmr.msrb.gmra.mxu3 %vm692_vm1, %v886_v42 }
 0x2d2   : > { %1026 = vmatpush.msrb.mxu3 %v1484_v11 }
 0x2d3   : > { %v805_v47 = vadd.f32 %v1388_v35, %v804_v43  ;;  %v755_v10 = vpop.xlane.xlu1 %754 }
 0x2d4   : > { %v1390_v48 = vpop.eup %1389  ;;  %v769_v50 = vadd.f32 1e-13, %v755_v10 }
 0x2d5   : > { %v816_v52 = vmul.f32 %v1390_v48, %v768_v36  ;;  %v809_v53 = vsel %vm808_vm12, %v1388_v35, %v805_v47  ;;  %vm821_vm14 = vweird.f32 %v1390_v48 }
 0x2d6   : > { %1391 = vrcp.f32 %v769_v50  ;;  %v814_v54 = vsel %vm811_vm13, %v813_v51, %v809_v53  ;;  %vm822_vm2 = vmor %vm820_vm15, %vm821_vm14  ;;  %v840_v15 = vand.u32 2147483648, %v769_v50  ;;  %v838_v16 = vand.u32 2147483647, %v769_v50 }
 0x2d7   : > { %v817_v39 = vsub.f32 1.0, %v816_v52  ;;  %v887_v56 = vmul.f32 %v1535_v44, %v814_v54  ;;  %vm834_vm5 = vweird.f32 %v769_v50 }
 0x2d8   : > { %v761_v55 = vpop.xlane.xlu2 %760  ;;  %v841_v22 = vor.u32 1.1754944e-38, %v840_v15  ;;  %vm839_vm7 = vcmp.eq.f32.partialorder %v838_v16, 8.507059e+37  ;;  %v1408_v16 = vmov 1934713408  }
 0x2d9   : > { %v818_v58 = vmul.f32 %v1390_v48, %v817_v39  ;;  %v771_v61 = vadd.f32 1e-13, %v761_v55  ;;  %1319 = vmatmul.msk.f32.vlgmr.msra.gmra.mxu2 %vm692_vm1, %v887_v56 }
 0x2da   : > { %1049 = vmatpush.msra.mxu2 %v1469_v5 }
 0x2db   : > { %v819_v11 = vadd.f32 %v1390_v48, %v818_v58  ;;  %1393 = vrcp.f32 %v771_v61  ;;  %v758_v63 = vpop.xlane.xlu0 %757  ;;  %vm862_vm9 = vweird.f32 %v771_v61  ;;  %v868_v25 = vand.u32 2147483648, %v771_v61 }
 0x2dc   : > { %v1392_v1 = vpop.eup %1391  ;;  %v770_v2 = vadd.f32 1e-13, %v758_v63  ;;  %v866_v29 = vand.u32 2147483647, %v771_v61  ;;  %v1407_v58 = vmov 1983009808  }
 0x2dd   : > { %v830_v6 = vmul.f32 %v1392_v1, %v769_v50  ;;  %v823_v7 = vsel %vm822_vm2, %v1390_v48, %v819_v11  ;;  %vm835_vm4 = vweird.f32 %v1392_v1  ;;  %v869_v36 = vor.u32 1.1754944e-38, %v868_v25 }
 0x2de   : > { %1395 = vrcp.f32 %v770_v2  ;;  %v828_v9 = vsel %vm825_vm3, %v827_v4, %v823_v7  ;;  %vm836_vm6 = vmor %vm834_vm5, %vm835_vm4  ;;  %v854_v30 = vand.u32 2147483648, %v770_v2  ;;  %v852_v33 = vand.u32 2147483647, %v770_v2 }
 0x2df   : > { %v831_v44 = vsub.f32 1.0, %v830_v6  ;;  %v888_v12 = vmul.f32 %v1539_v49, %v828_v9  ;;  %vm848_vm12 = vweird.f32 %v770_v2  ;;  %vm867_vm13 = vcmp.eq.f32.partialorder %v866_v29, 8.507059e+37 }
 0x2e0   : > { %v855_v40 = vor.u32 1.1754944e-38, %v854_v30  ;;  %vm853_vm15 = vcmp.eq.f32.partialorder %v852_v33, 8.507059e+37  ;;  %v1083_v59 = vunpack.c.l.s4 %v1407_v58 }
 0x2e1   : > { %v1394_v13 = vpop.eup %1393  ;;  %v832_v14 = vmul.f32 %v1392_v1, %v831_v44  ;;  %1320 = vmatmul.msk.f32.vlgmr.msra.gmra.mxu3 %vm692_vm1, %v888_v12 }
 0x2e2   : > { %v858_v17 = vmul.f32 %v1394_v13, %v771_v61  ;;  %1072 = vmatpush.msra.mxu3 %v1474_v8  ;;  %vm863_vm8 = vweird.f32 %v1394_v13  ;;  %v1084_v63 = vunpack.c.0.s8 %v1083_v59 }
 0x2e3   : > { %v833_v5 = vadd.f32 %v1392_v1, %v832_v14  ;;  %v764_v18 = vpop.xlane.xlu1 %763  ;;  %vm1572_vm10 = vmor %vm862_vm9, %vm863_vm8 }
 0x2e4   : > { %v1396_v19 = vpop.eup %1395  ;;  %v859_v20 = vsub.f32 1.0, %v858_v17  ;;  %v772_v21 = vadd.f32 1e-13, %v764_v18  ;;  %v1131_v17 = vunpack.c.l.s4 %v1408_v16 }
 0x2e5   : > { %v844_v23 = vmul.f32 %v1396_v19, %v770_v2  ;;  %v837_v49 = vsel %vm836_vm6, %v1392_v1, %v833_v5  ;;  %vm849_vm11 = vweird.f32 %v1396_v19  ;;  %vm1078_vm6 = vcmask 1047556  }
 0x2e6   : > { %v860_v24 = vmul.f32 %v1394_v13, %v859_v20  ;;  %1397 = vrcp.f32 %v772_v21  ;;  %v842_v27 = vsel %vm839_vm7, %v841_v22, %v837_v49  ;;  %vm850_vm14 = vmor %vm848_vm12, %vm849_vm11  ;;  %v882_v46 = vand.u32 2147483648, %v772_v21 }
 0x2e7   : > { %v845_v26 = vsub.f32 1.0, %v844_v23  ;;  %v889_v8 = vmul.f32 %v1543_v57, %v842_v27  ;;  %v880_v48 = vand.u32 2147483647, %v772_v21  ;;  %vm876_vm3 = vweird.f32 %v772_v21 }
 0x2e8   : > { %v861_v28 = vadd.f32 %v1394_v13, %v860_v24  ;;  %v883_v51 = vor.u32 1.1754944e-38, %v882_v46  ;;  %v1132_v24 = vunpack.c.0.s8 %v1131_v17  ;;  %vm1217_vm7 = vcmask 785408  }
 0x2e9   : > { %v846_v32 = vmul.f32 %v1396_v19, %v845_v26  ;;  %1321 = vmatmul.msk.f32.vlgmr.msrb.gmra.mxu2 %vm692_vm1, %v889_v8  ;;  %vm881_vm5 = vcmp.eq.f32.partialorder %v880_v48, 8.507059e+37 }
 0x2ea   : > { %v865_v35 = vsel %vm1572_vm10, %v1394_v13, %v861_v28 }
 0x2eb   : > { %v847_v37 = vadd.f32 %v1396_v19, %v846_v32  ;;  %v870_v41 = vsel %vm867_vm13, %v869_v36, %v865_v35 }
 0x2ec   : > { %v1398_v38 = vpop.eup %1397  ;;  %v891_v47 = vmul.f32 %v1547_v60, %v870_v41 }
 0x2ed   : > { %v872_v57 = vmul.f32 %v1398_v38, %v772_v21  ;;  %v851_v34 = vsel %vm850_vm14, %v1396_v19, %v847_v37  ;;  %vm877_vm2 = vweird.f32 %v1398_v38 }
 0x2ee   : > { %v856_v42 = vsel %vm853_vm15, %v855_v40, %v851_v34  ;;  %vm878_vm4 = vmor %vm876_vm3, %vm877_vm2 }
 0x2ef   : > { %v873_v43 = vsub.f32 1.0, %v872_v57  ;;  %v890_v45 = vmul.f32 %v1551_v0, %v856_v42 }
 0x2f1   : > { %v874_v10 = vmul.f32 %v1398_v38, %v873_v43  ;;  %1322 = vmatmul.msk.f32.vlgmr.msrb.gmra.mxu3 %vm692_vm1, %v890_v45  ;;  %1323 = vmatmul.msk.f32.vlgmr.msra.gmra.mxu2 %vm692_vm1, %v891_v47 }
 0x2f3   : > { %v875_v50 = vadd.f32 %v1398_v38, %v874_v10 }
 0x2f5   : > { %v879_v52 = vsel %vm878_vm4, %v1398_v38, %v875_v50 }
 0x2f6   : > { %v884_v53 = vsel %vm881_vm5, %v883_v51, %v879_v52 }
 0x2f7   : > { %v892_v39 = vmul.f32 %v1555_v3, %v884_v53 }
 0x2f9   : > { %1324 = vmatmul.msk.f32.vlgmr.msra.gmra.mxu3 %vm692_vm1, %v892_v39  ;;  %vm1215_vm1 = vcmask 523264  }
 0x34c   : > { %v913_v0 = vpop.f32.mrf.mxu2 }
 0x34d   : > { %v1080_v6 = vrot.slane %v913_v0, 4 }
 0x354   : > { %v936_v60 = vpop.f32.mrf.mxu3 }
 0x355   : > { %v1092_v62 = vrot.slane %v936_v60, 4 }
 0x35c   : > { %v959_v54 = vpop.f32.mrf.mxu2 }
 0x35d   : > { %v1077_v2 = vrot.slane %v959_v54, 4  ;;  %v1081_v12 = vsel %vm1078_vm6, %v959_v54, %v1080_v6 }
 0x35e   : > { %v1089_v19 = vperm.slane %v1081_v12, %v1084_v63 }
 0x35f   : > { %v1079_v13 = vsel %vm1078_vm6, %v1077_v2, %v913_v0 }
 0x360   : > { %v1085_v21 = vperm.slane %v1079_v13, %v1084_v63 }
 0x362   : > { %v1128_v8 = vrot.slane %v1085_v21, 4 }
 0x364   : > { %v982_v55 = vpop.f32.mrf.mxu3 }
 0x365   : > { %v1090_v61 = vrot.slane %v982_v55, 4  ;;  %v1093_v11 = vsel %vm1078_vm6, %v982_v55, %v1092_v62 }
 0x366   : > { %v1587_v4 = vperm.slane %v1093_v11, %v1084_v63 }
 0x367   : > { %v1091_v1 = vsel %vm1078_vm6, %v1090_v61, %v936_v60 }
 0x368   : > { %v1097_v7 = vperm.slane %v1091_v1, %v1084_v63  ;;  %v1138_v14 = vrot.slane %v1587_v4, 4 }
 0x36a   : > { %v1126_v5 = vrot.slane %v1097_v7, 4  ;;  %v1139_v25 = vsel %vm1078_vm6, %v1138_v14, %v1089_v19  ;;  %v1129_v40 = vsel %vm1078_vm6, %v1097_v7, %v1128_v8 }
 0x36b   : > { %v1145_v32 = vperm.slane %v1139_v25, %v1132_v24  ;;  %v1137_v47 = vperm.slane %v1129_v40, %v1132_v24 }
 0x36c   : > { %v1005_v56 = vpop.f32.mrf.mxu2  ;;  %v1127_v29 = vsel %vm1078_vm6, %v1126_v5, %v1085_v21 }
 0x36d   : > { %v1104_v15 = vrot.slane %v1005_v56, 4  ;;  %v1133_v37 = vperm.slane %v1127_v29, %v1132_v24  ;;  %v1184_v45 = vrot.slane %v1145_v32, 4  ;;  %v1180_v61 = vrot.slane %v1137_v47, 4 }
 0x36f   : > { %v1176_v48 = vrot.slane %v1133_v37, 4 }
 0x374   : > { %v1028_v3 = vpop.f32.mrf.mxu3  ;;  %v1051_v44 = vpop.f32.mrf.mxu2 }
 0x375   : > { %v1102_v9 = vrot.slane %v1051_v44, 4  ;;  %v1105_v20 = vsel %vm1078_vm6, %v1051_v44, %v1104_v15  ;;  %v1116_v22 = vrot.slane %v1028_v3, 4 }
 0x376   : > { %v1113_v26 = vperm.slane %v1105_v20, %v1084_v63 }
 0x377   : > { %v1103_v18 = vsel %vm1078_vm6, %v1102_v9, %v1005_v56  ;;  %v1140_v56 = vrot.slane %v1089_v19, 4 }
 0x378   : > { %v1109_v23 = vperm.slane %v1103_v18, %v1084_v63  ;;  %v1164_v38 = vrot.slane %v1113_v26, 4 }
 0x379   : > { %v1141_v59 = vsel %vm1078_vm6, %v1587_v4, %v1140_v56 }
 0x37a   : > { %v1152_v33 = vrot.slane %v1109_v23, 4 }
 0x37c   : > { %v1074_v49 = vpop.f32.mrf.mxu3 }
 0x37d   : > { %v1114_v27 = vrot.slane %v1074_v49, 4  ;;  %v1117_v28 = vsel %vm1078_vm6, %v1074_v49, %v1116_v22 }
 0x37e   : > { %v1125_v30 = vperm.slane %v1117_v28, %v1084_v63 }
 0x37f   : > { %v1115_v31 = vsel %vm1078_vm6, %v1114_v27, %v1028_v3 }
 0x380   : > { %v1121_v35 = vperm.slane %v1115_v31, %v1084_v63  ;;  %v1162_v36 = vrot.slane %v1125_v30, 4  ;;  %v1165_v42 = vsel %vm1078_vm6, %v1125_v30, %v1164_v38  ;;  %v1149_v63 = vperm.slane %v1141_v59, %v1132_v24 }
 0x381   : > { %v1173_v39 = vperm.slane %v1165_v42, %v1132_v24 }
 0x382   : > { %v1150_v57 = vrot.slane %v1121_v35, 4  ;;  %v1163_v34 = vsel %vm1078_vm6, %v1162_v36, %v1113_v26  ;;  %v1153_v41 = vsel %vm1078_vm6, %v1121_v35, %v1152_v33  ;;  %v1188_v2 = vrot.slane %v1149_v63, 4 }
 0x383   : > { %v1169_v43 = vperm.slane %v1163_v34, %v1132_v24  ;;  %v1161_v46 = vperm.slane %v1153_v41, %v1132_v24  ;;  %v1186_v62 = vrot.slane %v1173_v39, 4 }
 0x384   : > { %v1151_v10 = vsel %vm1078_vm6, %v1150_v57, %v1109_v23  ;;  %v1189_v3 = vsel %vm1078_vm6, %v1173_v39, %v1188_v2 }
 0x385   : > { %v1185_v50 = vsel %vm1078_vm6, %v1169_v43, %v1184_v45  ;;  %v1182_v51 = vrot.slane %v1169_v43, 4  ;;  %v1178_v52 = vrot.slane %v1161_v46, 4  ;;  %v1157_v53 = vperm.slane %v1151_v10, %v1132_v24 }
 0x386   : > { %1203 = vrot.lane.b32.xlu2 %v1185_v50, %s1409_s24  ;;  %v1181_v11 = vsel %vm1078_vm6, %v1161_v46, %v1180_v61  ;;  %v1187_v1 = vsel %vm1078_vm6, %v1186_v62, %v1149_v63 }
 0x387   : > { %v1179_v0 = vsel %vm1078_vm6, %v1178_v52, %v1137_v47  ;;  %v1177_v60 = vsel %vm1078_vm6, %v1157_v53, %v1176_v48  ;;  %v1174_v54 = vrot.slane %v1157_v53, 4  ;;  %v1183_v55 = vsel %vm1078_vm6, %v1182_v51, %v1145_v32 }
 0x388   : > { %1195 = vrot.lane.b32.xlu1 %v1179_v0, %s1410_s25  ;;  %1191 = vrot.lane.b32.xlu0 %v1177_v60, %s1409_s24 }
 0x389   : > { %v1175_v58 = vsel %vm1078_vm6, %v1174_v54, %v1133_v37 }
 0x38e   : > { %1199 = vrot.lane.b32.xlu2 %v1181_v11, %s1411_s26 }
 0x390   : > { %1207 = vrot.lane.b32.xlu0 %v1187_v1, %s1410_s25 }
 0x398   : > { %1211 = vrot.lane.b32.xlu0 %v1189_v3, %s1411_s26 }
 0x3e0   : > { %v1204_v6 = vpop.permute.xlu2 %1203 }
 0x3e1   : > { %v1219_v15 = vsel %vm260_vm0, %v1183_v55, %v1204_v6 }
 0x3e8   : > { %v1200_v9 = vpop.permute.xlu2 %1199 }
 0x3fa   : > { %v1196_v7 = vpop.permute.xlu1 %1195  ;;  %v1192_v44 = vpop.permute.xlu0 %1191 }
 0x3fb   : > { %v1214_v4 = vsel %vm260_vm0, %v1175_v58, %v1192_v44 }
 0x3fc   : > { %v1216_v12 = vsel %vm1215_vm1, %v1214_v4, %v1196_v7 }
 0x3fd   : > { %v1218_v13 = vsel %vm1217_vm7, %v1216_v12, %v1200_v9 }
 0x3fe   : > { %1222 = vst [vmem:[%s243_s30] sm:$0xff] %v1218_v13 }
 0x402   : > { %v1208_v14 = vpop.permute.xlu0 %1207 }
 0x403   : > { %v1220_v16 = vsel %vm1215_vm1, %v1219_v15, %v1208_v14 }
 0x40a   : > { %v1212_v17 = vpop.permute.xlu0 %1211 }
 0x40b   : > { %v1221_v5 = vsel %vm1217_vm7, %v1220_v16, %v1212_v17 }
 0x40c   : > { %1223 = vst [vmem:[%s243_s30 + $0x8] sm:$0xff] %v1221_v5 }
 0x40d PF: > { %s15_s18 = sadd.s32 1, %s1405_s18  }
 0x40e   : > { %p12_p5 = scmp.ge.s32.totalorder %s15_s18, 4  }
 0x410   :  { %14 = sbr.rel (!%p12_p5) target bundleno = 1 (0x1), region = 73 }

</bundles_post_ra>
